<compile_context>
chip_gen: v6e
topology: v6e:2x2x1
jax: 0.10.0
libtpu: 0.0.40
codegen_flags: <defaults>
</compile_context>

<pallas_src>
import jax
import jax.numpy as jnp
from jax.experimental import pallas as pl
from jax.experimental.pallas import tpu as pltpu

LOG_STD_MAX = 2.0
LOG_STD_MIN = -20.0


def _round_up(x, m):
    return (x + m - 1) // m * m


# ----------------------------------------------------------------------------
# Kernel body: one batch tile through the whole actor network.
# ----------------------------------------------------------------------------
def actor_kernel(x_ref, w1_ref, b1_ref, w2_ref, b2_ref, wh_ref, bh_ref, out_ref):
    """Fused 3-matmul actor MLP + heads for one batch tile.

    Dots run on the MXU (operands in compute_dtype, f32 accumulation);
    tanh/exp go to the EUP; bias add / ReLU / clamp run on the VPU.
    Output is a single lane-dense (tile, 2*a_pad) slab: [mean | std].
    """
    compute_dtype = w1_ref.dtype
    x = x_ref[...]  # already cast to compute_dtype by the wrapper

    h1 = jnp.dot(x, w1_ref[...], preferred_element_type=jnp.float32) + b1_ref[...]
    h1 = jnp.maximum(h1, 0.0).astype(compute_dtype)

    h2 = jnp.dot(h1, w2_ref[...], preferred_element_type=jnp.float32) + b2_ref[...]
    h2 = jnp.maximum(h2, 0.0).astype(compute_dtype)

    # Both heads fused into one matmul: columns [0:a_pad) = mean head,
    # [a_pad:2*a_pad) = log_std head.  a_pad is a multiple of 128, so the
    # split is lane-aligned and both stores are unmasked.
    heads = jnp.dot(h2, wh_ref[...], preferred_element_type=jnp.float32) + bh_ref[...]
    a_pad = out_ref.shape[-1] // 2

    mean = jnp.tanh(heads[:, :a_pad])
    std = jnp.exp(jnp.clip(heads[:, a_pad:], LOG_STD_MIN, LOG_STD_MAX))

    out_ref[...] = jnp.concatenate([mean, std], axis=-1).astype(out_ref.dtype)


# ----------------------------------------------------------------------------
# One-time parameter packing (call once per parameter update, not per forward).
# ----------------------------------------------------------------------------
def pack_params(params, *, compute_dtype=jnp.bfloat16):
    """Pad / fuse / cast weights once so actor_forward does no weight prep.

    Returns a dict of packed arrays plus the static dims needed for the launch.
    compute_dtype=bfloat16 is the fast MXU path on v5e/v6e/v7x; pointwise math
    inside the kernel is always f32.
    """
    w1, b1, w2, b2, wm, bm, ws, bs = params
    in_dims, fc1 = w1.shape
    fc2 = w2.shape[1]
    action_dim = wm.shape[1]

    in_pad = _round_up(max(in_dims, 128), 128)   # lane-aligned K for layer 1
    a_pad = _round_up(max(action_dim, 128), 128)  # 128-lane head columns

    w1_p = jnp.pad(w1, ((0, in_pad - in_dims), (0, 0))).astype(compute_dtype)
    # Fused [mean | log_std] head: (fc2, 2*a_pad), lane-aligned split at a_pad.
    wh = jnp.concatenate(
        [jnp.pad(wm, ((0, 0), (0, a_pad - action_dim))),
         jnp.pad(ws, ((0, 0), (0, a_pad - action_dim)))], axis=1).astype(compute_dtype)
    bh = jnp.concatenate(
        [jnp.pad(bm, ((0, 0), (0, a_pad - action_dim))),
         jnp.pad(bs, ((0, 0), (0, a_pad - action_dim)))], axis=1).astype(jnp.float32)

    return {
        "w1": w1_p, "b1": b1.astype(jnp.float32),
        "w2": w2.astype(compute_dtype), "b2": b2.astype(jnp.float32),
        "wh": wh, "bh": bh,
        "in_dims": in_dims, "in_pad": in_pad,
        "action_dim": action_dim, "a_pad": a_pad,
        "fc1": fc1, "fc2": fc2,
        "compute_dtype": jnp.dtype(compute_dtype),
    }


# ----------------------------------------------------------------------------
# Forward wrapper.
# ----------------------------------------------------------------------------
def actor_forward(state, packed, *, batch_tile=1024):
    """state: (B, input_dims) f32 -> (mean, std), each (B, action_dim) f32."""
    w1, b1 = packed["w1"], packed["b1"]
    w2, b2 = packed["w2"], packed["b2"]
    wh, bh = packed["wh"], packed["bh"]
    in_dims, in_pad = packed["in_dims"], packed["in_pad"]
    A, a_pad = packed["action_dim"], packed["a_pad"]
    fc1, fc2 = packed["fc1"], packed["fc2"]
    compute_dtype = packed["compute_dtype"]

    B, sd = state.shape
    assert sd == in_dims, f"expected input_dims={in_dims}, got {sd}"

    # --- Batch tiling: ~equal blocks, minimal padding, even block count for
    # --- v7x's 2 TensorCores once the batch is big enough to split.
    row_align = 8 if compute_dtype.itemsize >= 4 else 16
    batch_tile = max(row_align, _round_up(batch_tile, row_align))
    nblocks = max(1, pl.cdiv(B, batch_tile))
    if B > 256 and nblocks % 2 == 1:
        nblocks += 1
    tile = _round_up(pl.cdiv(B, nblocks), row_align)
    b_pad = nblocks * tile

    # Per-call input prep only: one pad + cast (bf16 halves the input DMA).
    state_p = jnp.pad(
        state, ((0, b_pad - B), (0, in_pad - in_dims))).astype(compute_dtype)

    grid = (nblocks,)
    full = lambda shape: pl.BlockSpec(shape, lambda i: (0, 0))  # resident weights

    flops = 2 * b_pad * (in_pad * fc1 + fc1 * fc2 + fc2 * 2 * a_pad)
    transcendentals = 2 * b_pad * a_pad  # tanh + exp
    bytes_accessed = (
        state_p.size * state_p.dtype.itemsize
        + w1.size * w1.dtype.itemsize
        + w2.size * w2.dtype.itemsize
        + wh.size * wh.dtype.itemsize
        + (b1.size + b2.size + bh.size) * 4
        + b_pad * 2 * a_pad * 4)

    # NOTE: VMEM at tile=1024 (bf16 weights/x, f32 intermediates + fused output,
    # double-buffered) is ~9 MiB -> fits the v5e 16 MiB scoped default; bump
    # vmem_limit_bytes in CompilerParams if batch_tile is pushed past ~2048.
    out = pl.pallas_call(
        actor_kernel,
        out_shape=jax.ShapeDtypeStruct((b_pad, 2 * a_pad), jnp.float32),
        grid_spec=pltpu.PrefetchScalarGridSpec(
            num_scalar_prefetch=0,
            grid=grid,
            in_specs=[
                pl.BlockSpec((tile, in_pad), lambda i: (i, 0)),  # x tile (moves)
                full((in_pad, fc1)),      # w1  (grid-invariant, resident)
                full((1, fc1)),           # b1
                full((fc1, fc2)),         # w2
                full((1, fc2)),           # b2
                full((fc2, 2 * a_pad)),   # fused head weights [mean | log_std]
                full((1, 2 * a_pad)),     # fused head bias
            ],
            out_specs=pl.BlockSpec((tile, 2 * a_pad), lambda i: (i, 0)),
        ),
        compiler_params=pltpu.CompilerParams(
            dimension_semantics=("parallel",),
        ),
        cost_estimate=pl.CostEstimate(
            flops=flops,
            transcendentals=transcendentals,
            bytes_accessed=bytes_accessed),
    )(state_p, w1, b1, w2, b2, wh, bh)

    mean = out[:B, :A]
    std = out[:B, a_pad:a_pad + A]
    return mean, std


# ----------------------------------------------------------------------------
# Init + pure-JAX reference (matches the PyTorch forward).
# ----------------------------------------------------------------------------
def init_params(key, input_dims, action_dim, fc1_dims=256, fc2_dims=256):
    """Deterministic init mimicking nn.Linear's uniform(-1/sqrt(fan_in), ...)."""
    def linear(key, fan_in, fan_out):
        kw, kb = jax.random.split(key)
        bound = 1.0 / jnp.sqrt(float(fan_in))
        w = jax.random.uniform(kw, (fan_in, fan_out), jnp.float32, -bound, bound)
        b = jax.random.uniform(kb, (1, fan_out), jnp.float32, -bound, bound)
        return w, b

    k1, k2, k3, k4 = jax.random.split(key, 4)
    w1, b1 = linear(k1, input_dims, fc1_dims)
    w2, b2 = linear(k2, fc1_dims, fc2_dims)
    wm, bm = linear(k3, fc2_dims, action_dim)   # actor_mean
    ws, bs = linear(k4, fc2_dims, action_dim)   # actor_log_std
    return (w1, b1, w2, b2, wm, bm, ws, bs)


def actor_ref(state, params):
    w1, b1, w2, b2, wm, bm, ws, bs = params
    h1 = jnp.maximum(state @ w1 + b1, 0.0)
    h2 = jnp.maximum(h1 @ w2 + b2, 0.0)
    mean = jnp.tanh(h2 @ wm + bm)
    log_std = jnp.clip(h2 @ ws + bs, LOG_STD_MIN, LOG_STD_MAX)
    return mean, jnp.exp(log_std)


if __name__ == "__main__":
    key = jax.random.PRNGKey(0)
    k_params, k_state = jax.random.split(key)

    B, INPUT_DIMS, ACTION_DIM = 8, 32, 4
    params = init_params(k_params, INPUT_DIMS, ACTION_DIM, fc1_dims=256, fc2_dims=256)
    state = jax.random.normal(k_state, (B, INPUT_DIMS), dtype=jnp.float32)

    mean_ref, std_ref = actor_ref(state, params)

    # --- f32 packing: tight correctness check against the reference. ---
    packed_f32 = pack_params(params, compute_dtype=jnp.float32)
    mean, std = jax.block_until_ready(actor_forward(state, packed_f32))
    assert mean.shape == (B, ACTION_DIM) and std.shape == (B, ACTION_DIM)
    assert jnp.allclose(mean, mean_ref, atol=1e-4, rtol=1e-4), "f32 mean mismatch"
    assert jnp.allclose(std, std_ref, atol=1e-4, rtol=1e-4), "f32 std mismatch"

    # --- bf16 packing (default fast path): loose tolerance (bf16 matmul inputs). ---
    packed_bf16 = pack_params(params)  # compute_dtype=bfloat16
    mean_b, std_b = jax.block_until_ready(actor_forward(state, packed_bf16))
    assert mean_b.shape == (B, ACTION_DIM) and std_b.shape == (B, ACTION_DIM)
    assert jnp.allclose(mean_b, mean_ref, atol=5e-2, rtol=5e-2), "bf16 mean mismatch"
    assert jnp.allclose(std_b, std_ref, atol=5e-2, rtol=5e-2), "bf16 std mismatch"

    print("KERNEL_OK")
</pallas_src>

<mosaic_0001>
module attributes {stable_mosaic.version = 11 : i64} {
  func.func @actor_kernel(%arg0: i32, %arg1: memref<8x128xf32, #tpu.memory_space<vmem>>, %arg2: memref<128x256xf32, #tpu.memory_space<vmem>>, %arg3: memref<1x256xf32, #tpu.memory_space<vmem>>, %arg4: memref<256x256xf32, #tpu.memory_space<vmem>>, %arg5: memref<1x256xf32, #tpu.memory_space<vmem>>, %arg6: memref<256x256xf32, #tpu.memory_space<vmem>>, %arg7: memref<1x256xf32, #tpu.memory_space<vmem>>, %arg8: memref<8x256xf32, #tpu.memory_space<vmem>>) attributes {dimension_semantics = [#tpu.dimension_semantics<parallel>], iteration_bounds = array<i64: 1>, scalar_prefetch = 0 : i64, scratch_operands = 0 : i64, tpu.core_type = #tpu.core_type<tc>, window_params = [{transform_indices = @transform_0, window_bounds = array<i64: 8, 128>}, {pipeline_mode = #tpu.pipeline_mode<synchronous>, transform_indices = @transform_1, window_bounds = array<i64: 128, 256>}, {pipeline_mode = #tpu.pipeline_mode<synchronous>, transform_indices = @transform_2, window_bounds = array<i64: 1, 256>}, {pipeline_mode = #tpu.pipeline_mode<synchronous>, transform_indices = @transform_3, window_bounds = array<i64: 256, 256>}, {pipeline_mode = #tpu.pipeline_mode<synchronous>, transform_indices = @transform_4, window_bounds = array<i64: 1, 256>}, {pipeline_mode = #tpu.pipeline_mode<synchronous>, transform_indices = @transform_5, window_bounds = array<i64: 256, 256>}, {pipeline_mode = #tpu.pipeline_mode<synchronous>, transform_indices = @transform_6, window_bounds = array<i64: 1, 256>}, {transform_indices = @transform_7, window_bounds = array<i64: 8, 256>}]} {
    %c0 = arith.constant 0 : index
    %c0_0 = arith.constant 0 : index
    %0 = vector.load %arg1[%c0, %c0_0] : memref<8x128xf32, #tpu.memory_space<vmem>>, vector<8x128xf32>
    %c0_1 = arith.constant 0 : index
    %c0_2 = arith.constant 0 : index
    %1 = vector.load %arg2[%c0_1, %c0_2] : memref<128x256xf32, #tpu.memory_space<vmem>>, vector<128x256xf32>
    %cst = arith.constant dense<0.000000e+00> : vector<8x256xf32>
    %2 = tpu.matmul %0, %1, %cst {dimension_numbers = #tpu.dot_dimension_numbers<[1], [0], [0], [1], [0, 0, 1, 1], [], []>} : vector<8x128xf32>, vector<128x256xf32>, vector<8x256xf32> -> vector<8x256xf32>
    %c0_3 = arith.constant 0 : index
    %c0_4 = arith.constant 0 : index
    %3 = vector.load %arg3[%c0_3, %c0_4] : memref<1x256xf32, #tpu.memory_space<vmem>>, vector<1x256xf32>
    %4 = vector.broadcast %3 : vector<1x256xf32> to vector<8x256xf32>
    %5 = arith.addf %2, %4 : vector<8x256xf32>
    %cst_5 = arith.constant 0.000000e+00 : f32
    %6 = vector.broadcast %cst_5 : f32 to vector<8x256xf32>
    %7 = arith.maximumf %5, %6 : vector<8x256xf32>
    %c0_6 = arith.constant 0 : index
    %c0_7 = arith.constant 0 : index
    %8 = vector.load %arg4[%c0_6, %c0_7] : memref<256x256xf32, #tpu.memory_space<vmem>>, vector<256x256xf32>
    %cst_8 = arith.constant dense<0.000000e+00> : vector<8x256xf32>
    %9 = tpu.matmul %7, %8, %cst_8 {dimension_numbers = #tpu.dot_dimension_numbers<[1], [0], [0], [1], [0, 0, 1, 1], [], []>} : vector<8x256xf32>, vector<256x256xf32>, vector<8x256xf32> -> vector<8x256xf32>
    %c0_9 = arith.constant 0 : index
    %c0_10 = arith.constant 0 : index
    %10 = vector.load %arg5[%c0_9, %c0_10] : memref<1x256xf32, #tpu.memory_space<vmem>>, vector<1x256xf32>
    %11 = vector.broadcast %10 : vector<1x256xf32> to vector<8x256xf32>
    %12 = arith.addf %9, %11 : vector<8x256xf32>
    %cst_11 = arith.constant 0.000000e+00 : f32
    %13 = vector.broadcast %cst_11 : f32 to vector<8x256xf32>
    %14 = arith.maximumf %12, %13 : vector<8x256xf32>
    %c0_12 = arith.constant 0 : index
    %c0_13 = arith.constant 0 : index
    %15 = vector.load %arg6[%c0_12, %c0_13] : memref<256x256xf32, #tpu.memory_space<vmem>>, vector<256x256xf32>
    %cst_14 = arith.constant dense<0.000000e+00> : vector<8x256xf32>
    %16 = tpu.matmul %14, %15, %cst_14 {dimension_numbers = #tpu.dot_dimension_numbers<[1], [0], [0], [1], [0, 0, 1, 1], [], []>} : vector<8x256xf32>, vector<256x256xf32>, vector<8x256xf32> -> vector<8x256xf32>
    %c0_15 = arith.constant 0 : index
    %c0_16 = arith.constant 0 : index
    %17 = vector.load %arg7[%c0_15, %c0_16] : memref<1x256xf32, #tpu.memory_space<vmem>>, vector<1x256xf32>
    %18 = vector.broadcast %17 : vector<1x256xf32> to vector<8x256xf32>
    %19 = arith.addf %16, %18 : vector<8x256xf32>
    %20 = vector.extract_strided_slice %19 {offsets = [0, 0], sizes = [8, 128], strides = [1, 1]} : vector<8x256xf32> to vector<8x128xf32>
    %21 = math.tanh %20 : vector<8x128xf32>
    %22 = vector.extract_strided_slice %19 {offsets = [0, 128], sizes = [8, 128], strides = [1, 1]} : vector<8x256xf32> to vector<8x128xf32>
    %cst_17 = arith.constant -2.000000e+01 : f32
    %cst_18 = arith.constant 2.000000e+00 : f32
    %23 = vector.broadcast %cst_17 : f32 to vector<8x128xf32>
    %24 = arith.maximumf %23, %22 : vector<8x128xf32>
    %25 = vector.broadcast %cst_18 : f32 to vector<8x128xf32>
    %26 = arith.minimumf %25, %24 : vector<8x128xf32>
    %27 = math.exp %26 : vector<8x128xf32>
    %28 = tpu.concatenate %21, %27 in 1 : vector<8x128xf32>, vector<8x128xf32> -> vector<8x256xf32>
    %c0_19 = arith.constant 0 : index
    %c0_20 = arith.constant 0 : index
    %29 = vector.load %arg8[%c0_19, %c0_20] : memref<8x256xf32, #tpu.memory_space<vmem>>, vector<8x256xf32>
    tpu.vector_store %arg8[%c0_19, %c0_20], %28 {strides = array<i32>} : memref<8x256xf32, #tpu.memory_space<vmem>>, vector<8x256xf32>,
    return
  }
  func.func @transform_0(%arg0: i32) -> (i32, i32) {
    %c0_i32 = arith.constant 0 : i32
    %c0_i32_0 = arith.constant 0 : i32
    return %arg0, %c0_i32 : i32, i32
  }
  func.func @transform_1(%arg0: i32) -> (i32, i32) {
    %c0_i32 = arith.constant 0 : i32
    %c0_i32_0 = arith.constant 0 : i32
    %c0_i32_1 = arith.constant 0 : i32
    return %c0_i32, %c0_i32_0 : i32, i32
  }
  func.func @transform_2(%arg0: i32) -> (i32, i32) {
    %c0_i32 = arith.constant 0 : i32
    %c0_i32_0 = arith.constant 0 : i32
    %c0_i32_1 = arith.constant 0 : i32
    return %c0_i32, %c0_i32_0 : i32, i32
  }
  func.func @transform_3(%arg0: i32) -> (i32, i32) {
    %c0_i32 = arith.constant 0 : i32
    %c0_i32_0 = arith.constant 0 : i32
    %c0_i32_1 = arith.constant 0 : i32
    return %c0_i32, %c0_i32_0 : i32, i32
  }
  func.func @transform_4(%arg0: i32) -> (i32, i32) {
    %c0_i32 = arith.constant 0 : i32
    %c0_i32_0 = arith.constant 0 : i32
    %c0_i32_1 = arith.constant 0 : i32
    return %c0_i32, %c0_i32_0 : i32, i32
  }
  func.func @transform_5(%arg0: i32) -> (i32, i32) {
    %c0_i32 = arith.constant 0 : i32
    %c0_i32_0 = arith.constant 0 : i32
    %c0_i32_1 = arith.constant 0 : i32
    return %c0_i32, %c0_i32_0 : i32, i32
  }
  func.func @transform_6(%arg0: i32) -> (i32, i32) {
    %c0_i32 = arith.constant 0 : i32
    %c0_i32_0 = arith.constant 0 : i32
    %c0_i32_1 = arith.constant 0 : i32
    return %c0_i32, %c0_i32_0 : i32, i32
  }
  func.func @transform_7(%arg0: i32) -> (i32, i32) {
    %c0_i32 = arith.constant 0 : i32
    %c0_i32_0 = arith.constant 0 : i32
    return %arg0, %c0_i32 : i32, i32
  }
}

</mosaic_0001>

<bundles_post_ra>
// kernel: tpu_custom_call.1
= control target key start
LH: loop header
LB: loop body
LE: loop exit
PB: predicated region body
PF: predicated region fallthrough
CT: control target
= control target key end

     0   :  { %12 = vsyncpa [#allocation3], 0  ;;  %s719_s0 = inlined_call_operand.hbm [shape: f32[8,128], index: 0, kind: input, shape index: {}]   ;;  %s720_s1 = inlined_call_operand.hbm [shape: f32[128,256], index: 1, kind: input, shape index: {}]   ;;  %s721_s2 = inlined_call_operand.vmem [shape: f32[1,256], index: 2, kind: input, shape index: {}]   ;;  %s722_s3 = inlined_call_operand.hbm [shape: f32[256,256], index: 3, kind: input, shape index: {}]   ;;  %s723_s4 = inlined_call_operand.vmem [shape: f32[1,256], index: 4, kind: input, shape index: {}]   ;;  %s724_s5 = inlined_call_operand.hbm [shape: f32[256,256], index: 5, kind: input, shape index: {}]   ;;  %s725_s6 = inlined_call_operand.vmem [shape: f32[1,256], index: 6, kind: input, shape index: {}]   ;;  %s726_s7 = inlined_call_operand.hbm [shape: f32[8,256], index: 7, kind: output, shape index: {}]  }
   0x1   :  { %13 = vsyncpa [#allocation6], 0 }
   0x2   :  { %14 = vsyncpa [#allocation9], 0 }
   0x3   :  { %15 = vsyncpa [#allocation4], 0  ;;  %s638_s24 = smov [#allocation5]  }
   0x4   :  { %s31_s25 = sshll.u32 %s638_s24, 4  ;;  %s32_s25 = int_to_ptr.vmem [resolvable:$true] %s31_s25 }
   0x5   :  { %s538_s26 = scalar_lea.vmem %s32_s25, 4096  ;;  %p543_p1 = scmp.lt.s32.totalorder %s32_s25, %s32_s25 }
   0x6   :  { %p539_p0 = scmp.ne.s32.totalorder %s32_s25, %s538_s26  ;;  %p544_p2 = scmp.lt.s32.totalorder %s538_s26, %s538_s26 }
   0x8   :  { %p545_p3 = por %p544_p2, %p543_p1 }
   0xa   :  { %p546_p4 = pnand %p545_p3, %p539_p0 }
   0xc   :  { %549 = shalt.err (!%p546_p4)
}
   0xd   :  { %s639_s27 = smov 256   ;;  %s640_s28 = smov 16  }
   0xe   :  { %37 = dma.hbm_to_vmem [thread:$0]  %s720_s1, 4096, %s32_s25, [#allocation6], %s639_s27, %s639_s27, %s640_s28  }
   0xf   :  { %s641_s8 = smov [#allocation2]   ;;  %s642_s10 = smov [#allocation7]  }
  0x10   :  { %s22_s9 = sshll.u32 %s641_s8, 4  ;;  %s45_s11 = sshll.u32 %s642_s10, 4  ;;  %s23_s9 = int_to_ptr.vmem [resolvable:$true] %s22_s9  ;;  %s46_s11 = int_to_ptr.vmem [resolvable:$true] %s45_s11 }
  0x11   :  { %s558_s12 = scalar_lea.vmem %s23_s9, 128  ;;  %p563_p6 = scmp.lt.s32.totalorder %s23_s9, %s23_s9 }
  0x12   :  { %p559_p5 = scmp.ne.s32.totalorder %s23_s9, %s558_s12  ;;  %p564_p7 = scmp.lt.s32.totalorder %s558_s12, %s558_s12 }
  0x14   :  { %p565_p8 = por %p564_p7, %p563_p6 }
  0x16   :  { %p566_p9 = pnand %p565_p8, %p559_p5 }
  0x18   :  { %569 = shalt.err (!%p566_p9)
}
  0x19   :  { %25 = dma.hbm_to_vmem [thread:$0]  %s719_s0, 128, %s23_s9, [#allocation3]  }
  0x1a   :  { %s578_s15 = scalar_lea.vmem %s46_s11, 8192  ;;  %p583_p11 = scmp.lt.s32.totalorder %s46_s11, %s46_s11 }
  0x1b   :  { %p579_p10 = scmp.ne.s32.totalorder %s46_s11, %s578_s15  ;;  %p584_p12 = scmp.lt.s32.totalorder %s578_s15, %s578_s15 }
  0x1d   :  { %p585_p13 = por %p584_p12, %p583_p11 }
  0x1f   :  { %p586_p0 = pnand %p585_p13, %p579_p10 }
  0x21   :  { %589 = shalt.err (!%p586_p0)
}
  0x22   :  { %51 = dma.hbm_to_vmem [thread:$0]  %s722_s3, 8192, %s46_s11, [#allocation6], %s639_s27, %s639_s27, %s640_s28  }
  0x23   :  { %s643_s17 = smov [#allocation8]  }
  0x24   :  { %s59_s18 = sshll.u32 %s643_s17, 4  ;;  %s60_s18 = int_to_ptr.vmem [resolvable:$true] %s59_s18 }
  0x25   :  { %s598_s19 = scalar_lea.vmem %s60_s18, 8192  ;;  %p603_p2 = scmp.lt.s32.totalorder %s60_s18, %s60_s18 }
  0x26   :  { %p599_p1 = scmp.ne.s32.totalorder %s60_s18, %s598_s19  ;;  %p604_p3 = scmp.lt.s32.totalorder %s598_s19, %s598_s19 }
  0x28   :  { %p605_p4 = por %p604_p3, %p603_p2 }
  0x2a   :  { %p606_p5 = pnand %p605_p4, %p599_p1 }
  0x2c   :  { %609 = shalt.err (!%p606_p5)
}
  0x2d   :  { %65 = dma.hbm_to_vmem [thread:$0]  %s724_s5, 8192, %s60_s18, [#allocation9], %s639_s27, %s639_s27, %s640_s28  }
  0x2e   :  { %630 = dma.done.wait [#allocation3], 128  }
  0x2f   :  { %631 = vsyncadd [#allocation3], 4294967168 }
  0x30   :  { %632 = dma.done.wait [#allocation6], 12288  }
  0x31   :  { %633 = vsyncadd [#allocation6], 4294955008 }
  0x32   :  { %634 = dma.done.wait [#allocation9], 8192  }
  0x33   :  { %635 = vsyncadd [#allocation9], 4294959104  ;;  %v644_v0 = vmov 0.0   ;;  %v112_v1 = vld [vmem:[#allocation5 + $0xf8] sm:$0xff]  ;;  %v111_v2 = vld [vmem:[#allocation5 + $0xf0] sm:$0xff] }
  0x34   :  { %189 = vmatprep.mubr.f32.mxu0 %v644_v0  ;;  %v110_v3 = vld [vmem:[#allocation5 + $0xe8] sm:$0xff]  ;;  %125 = vmatprep.subr.mxu0 %v112_v1  ;;  %v109_v4 = vld [vmem:[#allocation5 + $0xe0] sm:$0xff]  ;;  %v108_v5 = vld [vmem:[#allocation5 + $0xd8] sm:$0xff] }
  0x35   :  { %126 = vmatpush1.msra.mxu0 %v111_v2  ;;  %v107_v6 = vld [vmem:[#allocation5 + $0xd0] sm:$0xff]  ;;  %v106_v7 = vld [vmem:[#allocation5 + $0xc8] sm:$0xff]  ;;  %v105_v8 = vld [vmem:[#allocation5 + $0xc0] sm:$0xff] }
  0x36   :  { %127 = vmatprep.subr.mxu0 %v110_v3  ;;  %v104_v9 = vld [vmem:[#allocation5 + $0xb8] sm:$0xff]  ;;  %v103_v10 = vld [vmem:[#allocation5 + $0xb0] sm:$0xff]  ;;  %v102_v11 = vld [vmem:[#allocation5 + $0xa8] sm:$0xff] }
  0x37   :  { %128 = vmatpush1.msra.mxu0 %v109_v4  ;;  %v101_v12 = vld [vmem:[#allocation5 + $0xa0] sm:$0xff]  ;;  %v100_v13 = vld [vmem:[#allocation5 + $0x98] sm:$0xff]  ;;  %v99_v14 = vld [vmem:[#allocation5 + $0x90] sm:$0xff] }
  0x38   :  { %129 = vmatprep.subr.mxu0 %v108_v5  ;;  %v229_v15 = vld [vmem:[#allocation7 + $0xf8] sm:$0xff]  ;;  %v228_v16 = vld [vmem:[#allocation7 + $0xf0] sm:$0xff]  ;;  %v227_v17 = vld [vmem:[#allocation7 + $0xe8] sm:$0xff] }
  0x39   :  { %130 = vmatpush1.msra.mxu0 %v107_v6  ;;  %v98_v18 = vld [vmem:[#allocation5 + $0x88] sm:$0xff]  ;;  %274 = vmatprep.subr.mxu1 %v229_v15  ;;  %v226_v19 = vld [vmem:[#allocation7 + $0xe0] sm:$0xff]  ;;  %v225_v21 = vld [vmem:[#allocation7 + $0xd8] sm:$0xff] }
  0x3a   :  { %131 = vmatprep.subr.mxu0 %v106_v7  ;;  %v97_v20 = vld [vmem:[#allocation5 + $0x80] sm:$0xff]  ;;  %275 = vmatpush1.msra.mxu1 %v228_v16  ;;  %v96_v22 = vld [vmem:[#allocation5 + $0x78] sm:$0xff]  ;;  %v224_v23 = vld [vmem:[#allocation7 + $0xd0] sm:$0xff] }
  0x3b   :  { %132 = vmatpush1.msra.mxu0 %v105_v8  ;;  %276 = vmatprep.subr.mxu1 %v227_v17  ;;  %v95_v24 = vld [vmem:[#allocation5 + $0x70] sm:$0xff]  ;;  %v223_v25 = vld [vmem:[#allocation7 + $0xc8] sm:$0xff]  ;;  %v222_v27 = vld [vmem:[#allocation7 + $0xc0] sm:$0xff] }
  0x3c   :  { %133 = vmatprep.subr.mxu0 %v104_v9  ;;  %277 = vmatpush1.msra.mxu1 %v226_v19  ;;  %v94_v26 = vld [vmem:[#allocation5 + $0x68] sm:$0xff]  ;;  %v93_v28 = vld [vmem:[#allocation5 + $0x60] sm:$0xff]  ;;  %v221_v29 = vld [vmem:[#allocation7 + $0xb8] sm:$0xff] }
  0x3d   :  { %134 = vmatpush1.msra.mxu0 %v103_v10  ;;  %278 = vmatprep.subr.mxu1 %v225_v21  ;;  %v92_v30 = vld [vmem:[#allocation5 + $0x58] sm:$0xff]  ;;  %v220_v31 = vld [vmem:[#allocation7 + $0xb0] sm:$0xff]  ;;  %v219_v33 = vld [vmem:[#allocation7 + $0xa8] sm:$0xff] }
  0x3e   :  { %135 = vmatprep.subr.mxu0 %v102_v11  ;;  %279 = vmatpush1.msra.mxu1 %v224_v23  ;;  %v91_v32 = vld [vmem:[#allocation5 + $0x50] sm:$0xff]  ;;  %v90_v34 = vld [vmem:[#allocation5 + $0x48] sm:$0xff]  ;;  %v218_v35 = vld [vmem:[#allocation7 + $0xa0] sm:$0xff] }
  0x3f   :  { %136 = vmatpush1.msra.mxu0 %v101_v12  ;;  %280 = vmatprep.subr.mxu1 %v223_v25  ;;  %v89_v36 = vld [vmem:[#allocation5 + $0x40] sm:$0xff]  ;;  %v217_v37 = vld [vmem:[#allocation7 + $0x98] sm:$0xff]  ;;  %v216_v39 = vld [vmem:[#allocation7 + $0x90] sm:$0xff] }
  0x40   :  { %137 = vmatprep.subr.mxu0 %v100_v13  ;;  %281 = vmatpush1.msra.mxu1 %v222_v27  ;;  %v88_v38 = vld [vmem:[#allocation5 + $0x38] sm:$0xff]  ;;  %v87_v40 = vld [vmem:[#allocation5 + $0x30] sm:$0xff]  ;;  %v215_v41 = vld [vmem:[#allocation7 + $0x88] sm:$0xff] }
  0x41   :  { %138 = vmatpush1.msra.mxu0 %v99_v14  ;;  %282 = vmatprep.subr.mxu1 %v221_v29  ;;  %v86_v42 = vld [vmem:[#allocation5 + $0x28] sm:$0xff]  ;;  %v214_v43 = vld [vmem:[#allocation7 + $0x80] sm:$0xff]  ;;  %v213_v45 = vld [vmem:[#allocation7 + $0x78] sm:$0xff] }
  0x42   :  { %139 = vmatprep.subr.mxu0 %v98_v18  ;;  %283 = vmatpush1.msra.mxu1 %v220_v31  ;;  %v85_v44 = vld [vmem:[#allocation5 + $0x20] sm:$0xff]  ;;  %v84_v46 = vld [vmem:[#allocation5 + $0x18] sm:$0xff]  ;;  %v212_v47 = vld [vmem:[#allocation7 + $0x70] sm:$0xff] }
  0x43   :  { %140 = vmatpush1.msra.mxu0 %v97_v20  ;;  %284 = vmatprep.subr.mxu1 %v219_v33  ;;  %v83_v48 = vld [vmem:[#allocation5 + $0x10] sm:$0xff]  ;;  %v211_v49 = vld [vmem:[#allocation7 + $0x68] sm:$0xff]  ;;  %v210_v51 = vld [vmem:[#allocation7 + $0x60] sm:$0xff] }
  0x44   :  { %141 = vmatprep.subr.mxu0 %v96_v22  ;;  %285 = vmatpush1.msra.mxu1 %v218_v35  ;;  %v82_v50 = vld [vmem:[#allocation5 + $0x8] sm:$0xff]  ;;  %v81_v52 = vld [vmem:[#allocation5] sm:$0xff]  ;;  %v209_v53 = vld [vmem:[#allocation7 + $0x58] sm:$0xff] }
  0x45   :  { %142 = vmatpush1.msra.mxu0 %v95_v24  ;;  %286 = vmatprep.subr.mxu1 %v217_v37  ;;  %v80_v54 = vld [vmem:[#allocation2] sm:$0xff]  ;;  %v208_v55 = vld [vmem:[#allocation7 + $0x50] sm:$0xff]  ;;  %v207_v56 = vld [vmem:[#allocation7 + $0x48] sm:$0xff] }
  0x46   :  { %143 = vmatprep.subr.mxu0 %v94_v26  ;;  %287 = vmatpush1.msra.mxu1 %v216_v39  ;;  %v206_v57 = vld [vmem:[#allocation7 + $0x40] sm:$0xff]  ;;  %v205_v58 = vld [vmem:[#allocation7 + $0x38] sm:$0xff]  ;;  %v204_v59 = vld [vmem:[#allocation7 + $0x30] sm:$0xff] }
  0x47   :  { %144 = vmatpush1.msra.mxu0 %v93_v28  ;;  %288 = vmatprep.subr.mxu1 %v215_v41  ;;  %v203_v60 = vld [vmem:[#allocation7 + $0x28] sm:$0xff]  ;;  %v202_v61 = vld [vmem:[#allocation7 + $0x20] sm:$0xff]  ;;  %v201_v62 = vld [vmem:[#allocation7 + $0x18] sm:$0xff] }
  0x48   :  { %145 = vmatprep.subr.mxu0 %v92_v30  ;;  %289 = vmatpush1.msra.mxu1 %v214_v43  ;;  %v200_v63 = vld [vmem:[#allocation7 + $0x10] sm:$0xff]  ;;  %v199_v0 = vld [vmem:[#allocation7 + $0x8] sm:$0xff]  ;;  %v198_v1 = vld [vmem:[#allocation7] sm:$0xff] }
  0x49   :  { %146 = vmatpush1.msra.mxu0 %v91_v32  ;;  %290 = vmatprep.subr.mxu1 %v213_v45  ;;  %v261_v2 = vld [vmem:[#allocation7 + $0x1f8] sm:$0xff]  ;;  %v260_v3 = vld [vmem:[#allocation7 + $0x1f0] sm:$0xff]  ;;  %v259_v4 = vld [vmem:[#allocation7 + $0x1e8] sm:$0xff] }
  0x4a   :  { %147 = vmatprep.subr.mxu0 %v90_v34  ;;  %291 = vmatpush1.msra.mxu1 %v212_v47  ;;  %v258_v5 = vld [vmem:[#allocation7 + $0x1e0] sm:$0xff]  ;;  %v257_v6 = vld [vmem:[#allocation7 + $0x1d8] sm:$0xff]  ;;  %v256_v7 = vld [vmem:[#allocation7 + $0x1d0] sm:$0xff] }
  0x4b   :  { %148 = vmatpush1.msra.mxu0 %v89_v36  ;;  %292 = vmatprep.subr.mxu1 %v211_v49  ;;  %v255_v8 = vld [vmem:[#allocation7 + $0x1c8] sm:$0xff]  ;;  %v254_v9 = vld [vmem:[#allocation7 + $0x1c0] sm:$0xff]  ;;  %v253_v10 = vld [vmem:[#allocation7 + $0x1b8] sm:$0xff] }
  0x4c   :  { %149 = vmatprep.subr.mxu0 %v88_v38  ;;  %293 = vmatpush1.msra.mxu1 %v210_v51  ;;  %v252_v11 = vld [vmem:[#allocation7 + $0x1b0] sm:$0xff]  ;;  %v251_v12 = vld [vmem:[#allocation7 + $0x1a8] sm:$0xff]  ;;  %v250_v13 = vld [vmem:[#allocation7 + $0x1a0] sm:$0xff] }
  0x4d   :  { %150 = vmatpush1.msra.mxu0 %v87_v40  ;;  %294 = vmatprep.subr.mxu1 %v209_v53  ;;  %v249_v14 = vld [vmem:[#allocation7 + $0x198] sm:$0xff]  ;;  %v248_v15 = vld [vmem:[#allocation7 + $0x190] sm:$0xff]  ;;  %v247_v16 = vld [vmem:[#allocation7 + $0x188] sm:$0xff] }
  0x4e   :  { %151 = vmatprep.subr.mxu0 %v86_v42  ;;  %295 = vmatpush1.msra.mxu1 %v208_v55  ;;  %v246_v17 = vld [vmem:[#allocation7 + $0x180] sm:$0xff]  ;;  %v245_v18 = vld [vmem:[#allocation7 + $0x178] sm:$0xff]  ;;  %v244_v19 = vld [vmem:[#allocation7 + $0x170] sm:$0xff] }
  0x4f   :  { %152 = vmatpush1.msra.mxu0 %v85_v44  ;;  %296 = vmatprep.subr.mxu1 %v207_v56  ;;  %v243_v20 = vld [vmem:[#allocation7 + $0x168] sm:$0xff]  ;;  %v242_v21 = vld [vmem:[#allocation7 + $0x160] sm:$0xff]  ;;  %v241_v22 = vld [vmem:[#allocation7 + $0x158] sm:$0xff] }
  0x50   :  { %153 = vmatprep.subr.mxu0 %v84_v46  ;;  %297 = vmatpush1.msra.mxu1 %v206_v57  ;;  %v240_v23 = vld [vmem:[#allocation7 + $0x150] sm:$0xff]  ;;  %v239_v24 = vld [vmem:[#allocation7 + $0x148] sm:$0xff]  ;;  %v238_v25 = vld [vmem:[#allocation7 + $0x140] sm:$0xff] }
  0x51   :  { %154 = vmatpush1.msra.mxu0 %v83_v48  ;;  %298 = vmatprep.subr.mxu1 %v205_v58  ;;  %v237_v26 = vld [vmem:[#allocation7 + $0x138] sm:$0xff]  ;;  %v236_v27 = vld [vmem:[#allocation7 + $0x130] sm:$0xff]  ;;  %v235_v28 = vld [vmem:[#allocation7 + $0x128] sm:$0xff] }
  0x52   :  { %155 = vmatprep.subr.mxu0 %v82_v50  ;;  %299 = vmatpush1.msra.mxu1 %v204_v59  ;;  %v234_v29 = vld [vmem:[#allocation7 + $0x120] sm:$0xff]  ;;  %v233_v30 = vld [vmem:[#allocation7 + $0x118] sm:$0xff]  ;;  %v232_v31 = vld [vmem:[#allocation7 + $0x110] sm:$0xff] }
  0x53   :  { %156 = vmatpush1.msra.mxu0 %v81_v52  ;;  %300 = vmatprep.subr.mxu1 %v203_v60  ;;  %v231_v32 = vld [vmem:[#allocation7 + $0x108] sm:$0xff]  ;;  %v230_v33 = vld [vmem:[#allocation7 + $0x100] sm:$0xff]  ;;  %v378_v34 = vld [vmem:[#allocation8 + $0xf8] sm:$0xff] }
  0x54   :  { %190 = vmatmul.mubr.f32.vlgmr.msra.gmra.mxu0 %v80_v54  ;;  %301 = vmatpush1.msra.mxu1 %v202_v61  ;;  %v377_v35 = vld [vmem:[#allocation8 + $0xf0] sm:$0xff]  ;;  %v376_v36 = vld [vmem:[#allocation8 + $0xe8] sm:$0xff]  ;;  %v375_v37 = vld [vmem:[#allocation8 + $0xe0] sm:$0xff] }
  0x55   :  { %302 = vmatprep.subr.mxu1 %v201_v62  ;;  %423 = vmatprep.subr.mxu0 %v378_v34  ;;  %v374_v38 = vld [vmem:[#allocation8 + $0xd8] sm:$0xff]  ;;  %v373_v39 = vld [vmem:[#allocation8 + $0xd0] sm:$0xff]  ;;  %v372_v40 = vld [vmem:[#allocation8 + $0xc8] sm:$0xff] }
  0x56   :  { %303 = vmatpush1.msra.mxu1 %v200_v63  ;;  %424 = vmatpush1.msra.mxu0 %v377_v35  ;;  %v371_v41 = vld [vmem:[#allocation8 + $0xc0] sm:$0xff]  ;;  %v370_v42 = vld [vmem:[#allocation8 + $0xb8] sm:$0xff]  ;;  %v369_v43 = vld [vmem:[#allocation8 + $0xb0] sm:$0xff] }
  0x57   :  { %304 = vmatprep.subr.mxu1 %v199_v0  ;;  %425 = vmatprep.subr.mxu0 %v376_v36  ;;  %v368_v44 = vld [vmem:[#allocation8 + $0xa8] sm:$0xff]  ;;  %v367_v45 = vld [vmem:[#allocation8 + $0xa0] sm:$0xff]  ;;  %v366_v46 = vld [vmem:[#allocation8 + $0x98] sm:$0xff] }
  0x58   :  { %305 = vmatpush1.msra.mxu1 %v198_v1  ;;  %426 = vmatpush1.msra.mxu0 %v375_v37  ;;  %v365_v47 = vld [vmem:[#allocation8 + $0x90] sm:$0xff]  ;;  %v364_v48 = vld [vmem:[#allocation8 + $0x88] sm:$0xff]  ;;  %v363_v49 = vld [vmem:[#allocation8 + $0x80] sm:$0xff] }
  0x59   :  { %306 = vmatprep.subr.mxu1 %v261_v2  ;;  %427 = vmatprep.subr.mxu0 %v374_v38  ;;  %v362_v50 = vld [vmem:[#allocation8 + $0x78] sm:$0xff]  ;;  %v361_v51 = vld [vmem:[#allocation8 + $0x70] sm:$0xff]  ;;  %v360_v52 = vld [vmem:[#allocation8 + $0x68] sm:$0xff] }
  0x5a   :  { %307 = vmatpush2.msra.mxu1 %v260_v3  ;;  %428 = vmatpush1.msra.mxu0 %v373_v39  ;;  %v359_v53 = vld [vmem:[#allocation8 + $0x60] sm:$0xff]  ;;  %v358_v54 = vld [vmem:[#allocation8 + $0x58] sm:$0xff]  ;;  %v357_v55 = vld [vmem:[#allocation8 + $0x50] sm:$0xff] }
  0x5b   :  { %308 = vmatprep.subr.mxu1 %v259_v4  ;;  %429 = vmatprep.subr.mxu0 %v372_v40  ;;  %v356_v56 = vld [vmem:[#allocation8 + $0x48] sm:$0xff]  ;;  %v355_v57 = vld [vmem:[#allocation8 + $0x40] sm:$0xff]  ;;  %v354_v58 = vld [vmem:[#allocation8 + $0x38] sm:$0xff] }
  0x5c   :  { %309 = vmatpush2.msra.mxu1 %v258_v5  ;;  %430 = vmatpush1.msra.mxu0 %v371_v41  ;;  %v353_v59 = vld [vmem:[#allocation8 + $0x30] sm:$0xff]  ;;  %v352_v60 = vld [vmem:[#allocation8 + $0x28] sm:$0xff]  ;;  %v351_v61 = vld [vmem:[#allocation8 + $0x20] sm:$0xff] }
  0x5d   :  { %310 = vmatprep.subr.mxu1 %v257_v6  ;;  %431 = vmatprep.subr.mxu0 %v370_v42  ;;  %v350_v62 = vld [vmem:[#allocation8 + $0x18] sm:$0xff]  ;;  %v349_v63 = vld [vmem:[#allocation8 + $0x10] sm:$0xff]  ;;  %v348_v0 = vld [vmem:[#allocation8 + $0x8] sm:$0xff] }
  0x5e   :  { %311 = vmatpush2.msra.mxu1 %v256_v7  ;;  %432 = vmatpush1.msra.mxu0 %v369_v43  ;;  %v347_v1 = vld [vmem:[#allocation8] sm:$0xff]  ;;  %v410_v2 = vld [vmem:[#allocation8 + $0x1f8] sm:$0xff]  ;;  %v409_v3 = vld [vmem:[#allocation8 + $0x1f0] sm:$0xff] }
  0x5f   :  { %312 = vmatprep.subr.mxu1 %v255_v8  ;;  %433 = vmatprep.subr.mxu0 %v368_v44  ;;  %v408_v4 = vld [vmem:[#allocation8 + $0x1e8] sm:$0xff]  ;;  %v407_v5 = vld [vmem:[#allocation8 + $0x1e0] sm:$0xff]  ;;  %v406_v6 = vld [vmem:[#allocation8 + $0x1d8] sm:$0xff] }
  0x60   :  { %313 = vmatpush2.msra.mxu1 %v254_v9  ;;  %434 = vmatpush1.msra.mxu0 %v367_v45  ;;  %v405_v7 = vld [vmem:[#allocation8 + $0x1d0] sm:$0xff]  ;;  %v404_v8 = vld [vmem:[#allocation8 + $0x1c8] sm:$0xff]  ;;  %v403_v9 = vld [vmem:[#allocation8 + $0x1c0] sm:$0xff] }
  0x61   :  { %314 = vmatprep.subr.mxu1 %v253_v10  ;;  %435 = vmatprep.subr.mxu0 %v366_v46  ;;  %v402_v10 = vld [vmem:[#allocation8 + $0x1b8] sm:$0xff]  ;;  %v385_v40 = vld [vmem:[#allocation8 + $0x130] sm:$0xff]  ;;  %v384_v41 = vld [vmem:[#allocation8 + $0x128] sm:$0xff] }
  0x62   :  { %315 = vmatpush2.msra.mxu1 %v252_v11  ;;  %436 = vmatpush1.msra.mxu0 %v365_v47  ;;  %v401_v11 = vld [vmem:[#allocation8 + $0x1b0] sm:$0xff]  ;;  %v386_v39 = vld [vmem:[#allocation8 + $0x138] sm:$0xff]  ;;  %v383_v42 = vld [vmem:[#allocation8 + $0x120] sm:$0xff] }
  0x63   :  { %316 = vmatprep.subr.mxu1 %v251_v12  ;;  %437 = vmatprep.subr.mxu0 %v364_v48  ;;  %v400_v12 = vld [vmem:[#allocation8 + $0x1a8] sm:$0xff]  ;;  %v382_v43 = vld [vmem:[#allocation8 + $0x118] sm:$0xff]  ;;  %v381_v44 = vld [vmem:[#allocation8 + $0x110] sm:$0xff] }
  0x64   :  { %317 = vmatpush2.msra.mxu1 %v250_v13  ;;  %438 = vmatpush1.msra.mxu0 %v363_v49  ;;  %v399_v13 = vld [vmem:[#allocation8 + $0x1a0] sm:$0xff]  ;;  %v380_v45 = vld [vmem:[#allocation8 + $0x108] sm:$0xff]  ;;  %v262_v47 = vld [vmem:[%s723_s4] sm:$0x3]  ;;  %s645_s4 = smov [#allocation10]  }
  0x65   :  { %318 = vmatprep.subr.mxu1 %v249_v14  ;;  %439 = vmatprep.subr.mxu0 %v362_v50  ;;  %v398_v14 = vld [vmem:[#allocation8 + $0x198] sm:$0xff]  ;;  %v379_v46 = vld [vmem:[#allocation8 + $0x100] sm:$0xff]  ;;  %s507_s24 = sshll.u32 %s645_s4, 4  ;;  %s508_s24 = int_to_ptr.vmem [resolvable:$true] %s507_s24 }
  0x66   :  { %319 = vmatpush2.msra.mxu1 %v248_v15  ;;  %440 = vmatpush1.msra.mxu0 %v361_v51  ;;  %v397_v15 = vld [vmem:[#allocation8 + $0x190] sm:$0xff]  ;;  %s610_s25 = scalar_lea.vmem %s508_s24, 256  ;;  %p615_p7 = scmp.lt.s32.totalorder %s508_s24, %s508_s24 }
  0x67   :  { %320 = vmatprep.subr.mxu1 %v247_v16  ;;  %441 = vmatprep.subr.mxu0 %v360_v52  ;;  %v396_v16 = vld [vmem:[#allocation8 + $0x188] sm:$0xff]  ;;  %p611_p6 = scmp.ne.s32.totalorder %s508_s24, %s610_s25  ;;  %p616_p8 = scmp.lt.s32.totalorder %s610_s25, %s610_s25 }
  0x68   :  { %321 = vmatpush2.msra.mxu1 %v246_v17  ;;  %442 = vmatpush1.msra.mxu0 %v359_v53  ;;  %v395_v17 = vld [vmem:[#allocation8 + $0x180] sm:$0xff] }
  0x69   :  { %322 = vmatprep.subr.mxu1 %v245_v18  ;;  %443 = vmatprep.subr.mxu0 %v358_v54  ;;  %v394_v18 = vld [vmem:[#allocation8 + $0x178] sm:$0xff]  ;;  %p617_p9 = por %p616_p8, %p615_p7 }
  0x6a   :  { %323 = vmatpush2.msra.mxu1 %v244_v19  ;;  %444 = vmatpush1.msra.mxu0 %v357_v55  ;;  %v393_v19 = vld [vmem:[#allocation8 + $0x170] sm:$0xff] }
  0x6b   :  { %324 = vmatprep.subr.mxu1 %v243_v20  ;;  %445 = vmatprep.subr.mxu0 %v356_v56  ;;  %v392_v20 = vld [vmem:[#allocation8 + $0x168] sm:$0xff]  ;;  %v411_v56 = vld [vmem:[%s725_s6] sm:$0x3]  ;;  %p618_p10 = pnand %p617_p9, %p611_p6 }
  0x6c   :  { %325 = vmatpush2.msra.mxu1 %v242_v21  ;;  %446 = vmatpush1.msra.mxu0 %v355_v57  ;;  %v391_v21 = vld [vmem:[#allocation8 + $0x160] sm:$0xff] }
  0x6d   :  { %326 = vmatprep.subr.mxu1 %v241_v22  ;;  %447 = vmatprep.subr.mxu0 %v354_v58  ;;  %v390_v22 = vld [vmem:[#allocation8 + $0x158] sm:$0xff] }
  0x6e   :  { %327 = vmatpush2.msra.mxu1 %v240_v23  ;;  %448 = vmatpush1.msra.mxu0 %v353_v59  ;;  %v389_v23 = vld [vmem:[#allocation8 + $0x150] sm:$0xff] }
  0x6f   :  { %328 = vmatprep.subr.mxu1 %v239_v24  ;;  %449 = vmatprep.subr.mxu0 %v352_v60  ;;  %v388_v24 = vld [vmem:[#allocation8 + $0x148] sm:$0xff] }
  0x70   :  { %329 = vmatpush2.msra.mxu1 %v238_v25  ;;  %450 = vmatpush1.msra.mxu0 %v351_v61  ;;  %v387_v25 = vld [vmem:[#allocation8 + $0x140] sm:$0xff] }
  0x71   :  { %330 = vmatprep.subr.mxu1 %v237_v26  ;;  %451 = vmatprep.subr.mxu0 %v350_v62  ;;  %v115_v26 = vlaneseq }
  0x72   :  { %331 = vmatpush2.msra.mxu1 %v236_v27  ;;  %452 = vmatpush1.msra.mxu0 %v349_v63 }
  0x73   :  { %332 = vmatprep.subr.mxu1 %v235_v28  ;;  %453 = vmatprep.subr.mxu0 %v348_v0  ;;  %v116_v27 = vshrl.u32 %v115_v26, 7 }
  0x74   :  { %333 = vmatpush2.msra.mxu1 %v234_v29  ;;  %454 = vmatpush1.msra.mxu0 %v347_v1  ;;  %v113_v29 = vld [vmem:[%s721_s2] sm:$0x3] }
  0x75   :  { %334 = vmatprep.subr.mxu1 %v233_v30  ;;  %455 = vmatprep.subr.mxu0 %v410_v2  ;;  %v117_v28 = vsub.s32 0, %v116_v27  ;;  %v121_v30 = vsub.s32 1, %v116_v27 }
  0x76   :  { %335 = vmatpush2.msra.mxu1 %v232_v31  ;;  %456 = vmatpush2.msra.mxu0 %v409_v3 }
  0x77   :  { %336 = vmatprep.subr.mxu1 %v231_v32  ;;  %457 = vmatprep.subr.mxu0 %v408_v4  ;;  %v118_v31 = vrot.slane %v113_v29, %v117_v28  ;;  %v122_v32 = vrot.slane %v113_v29, %v121_v30  ;;  %v267_v48 = vrot.slane %v262_v47, %v117_v28 }
  0x78   :  { %337 = vmatpush2.msra.mxu1 %v230_v33  ;;  %458 = vmatpush2.msra.mxu0 %v407_v5  ;;  %v271_v49 = vrot.slane %v262_v47, %v121_v30  ;;  %v416_v57 = vrot.slane %v411_v56, %v117_v28  ;;  %v420_v58 = vrot.slane %v411_v56, %v121_v30 }
  0x79   :  { %459 = vmatprep.subr.mxu0 %v406_v6 }
  0x7a   :  { %460 = vmatpush2.msra.mxu0 %v405_v7 }
  0x7b   :  { %461 = vmatprep.subr.mxu0 %v404_v8 }
  0x7c   :  { %462 = vmatpush2.msra.mxu0 %v403_v9 }
  0x7d   :  { %463 = vmatprep.subr.mxu0 %v402_v10 }
  0x7e   :  { %464 = vmatpush2.msra.mxu0 %v401_v11 }
  0x7f   :  { %465 = vmatprep.subr.mxu0 %v400_v12 }
  0x80   :  { %466 = vmatpush2.msra.mxu0 %v399_v13 }
  0x81   :  { %467 = vmatprep.subr.mxu0 %v398_v14 }
  0x82   :  { %468 = vmatpush2.msra.mxu0 %v397_v15 }
  0x83   :  { %469 = vmatprep.subr.mxu0 %v396_v16 }
  0x84   :  { %470 = vmatpush2.msra.mxu0 %v395_v17 }
  0x85   :  { %471 = vmatprep.subr.mxu0 %v394_v18 }
  0x86   :  { %472 = vmatpush2.msra.mxu0 %v393_v19 }
  0x87   :  { %473 = vmatprep.subr.mxu0 %v392_v20 }
  0x88   :  { %474 = vmatpush2.msra.mxu0 %v391_v21 }
  0x89   :  { %475 = vmatprep.subr.mxu0 %v390_v22 }
  0x8a   :  { %476 = vmatpush2.msra.mxu0 %v389_v23 }
  0x8b   :  { %477 = vmatprep.subr.mxu0 %v388_v24 }
  0x8c   :  { %478 = vmatpush2.msra.mxu0 %v387_v25 }
  0x8d   :  { %479 = vmatprep.subr.mxu0 %v386_v39 }
  0x8e   :  { %480 = vmatpush2.msra.mxu0 %v385_v40 }
  0x8f   :  { %481 = vmatprep.subr.mxu0 %v384_v41 }
  0x90   :  { %482 = vmatpush2.msra.mxu0 %v383_v42 }
  0x91   :  { %483 = vmatprep.subr.mxu0 %v382_v43 }
  0x92   :  { %484 = vmatpush2.msra.mxu0 %v381_v44 }
  0x93   :  { %485 = vmatprep.subr.mxu0 %v380_v45 }
  0x94   :  { %486 = vmatpush2.msra.mxu0 %v379_v46 }
 0x114   :  { %v191_v33 = vpop.f32.mrf.mxu0 }
 0x115   :  { %v192_v34 = vadd.f32 %v191_v33, %v118_v31 }
 0x116   :  { %v193_v35 = vpop.f32.mrf.mxu0 }
 0x117   :  { %v194_v36 = vadd.f32 %v193_v35, %v122_v32  ;;  %v196_v38 = vmax.f32 %v192_v34, 0.0 }
 0x119   :  { %v197_v37 = vmax.f32 %v194_v36, 0.0 }
 0x11b   :  { %338 = vmatprep.mubr.f32.mxu1 %v197_v37 }
 0x11c   :  { %339 = vmatmul.mubr.f32.vlgmr.msra.gmra.mxu1 %v196_v38 }
 0x1dc   :  { %v340_v50 = vpop.f32.mrf.mxu1 }
 0x1dd   :  { %v341_v51 = vadd.f32 %v340_v50, %v267_v48 }
 0x1de   :  { %v342_v52 = vpop.f32.mrf.mxu1 }
 0x1df   :  { %v343_v53 = vadd.f32 %v342_v52, %v271_v49  ;;  %v345_v55 = vmax.f32 %v341_v51, 0.0 }
 0x1e1   :  { %v346_v54 = vmax.f32 %v343_v53, 0.0 }
 0x1e3   :  { %487 = vmatprep.mubr.f32.mxu0 %v346_v54 }
 0x1e4   :  { %488 = vmatmul.mubr.f32.vlgmr.msra.gmra.mxu0 %v345_v55 }
 0x2a4   :  { %v489_v59 = vpop.f32.mrf.mxu0 }
 0x2a5   :  { %v490_v60 = vadd.f32 %v489_v59, %v416_v57 }
 0x2a6   :  { %v491_v61 = vpop.f32.mrf.mxu0 }
 0x2a7   :  { %526 = vtanh.f32 %v490_v60  ;;  %v492_v62 = vadd.f32 %v491_v61, %v420_v58 }
 0x2a9   :  { %v495_v63 = vmax.f32 %v492_v62, -20.0 }
 0x2ab   :  { %v496_v0 = vmin.f32 %v495_v63, 2.0 }
 0x2ad   :  { %v497_v1 = vmul.f32 1.442695, %v496_v0 }
 0x2af   :  { %528 = vpow2.f32 %v497_v1 }
 0x2b4   :  { %v527_v2 = vpop.eup %526 }
 0x2b5   :  { %499 = vst [vmem:[#allocation10] sm:$0xff] %v527_v2 }
 0x2bc   :  { %v529_v3 = vpop.eup %528 }
 0x2bd   :  { %500 = vst [vmem:[#allocation10 + $0x8] sm:$0xff] %v529_v3 }
 0x2be   :  { %621 = shalt.err (!%p618_p10)
}
 0x2bf   :  { %510 = dma.vmem_to_hbm [thread:$0]  %s508_s24, 256, %s726_s7, [#allocation4]  }
 0x2c0   :  { %636 = dma.done.wait [#allocation4], 256  }
 0x2c1   :  { %637 = vsyncadd [#allocation4], 4294967040 }
 0x2c2   :  { %514 = vsyncpa [#allocation3], 1 }
 0x2c3   :  { %515 = vsyncpa [#allocation6], 1 }
 0x2c4   :  { %516 = vsyncpa [#allocation9], 1 }
 0x2c5   :  { %517 = vsyncpa [#allocation4], 1 }

</bundles_post_ra>
